<compile_context>
chip_gen: v6e
topology: v6e:2x2x1
jax: 0.10.0
libtpu: 0.0.40
codegen_flags: <defaults>
</compile_context>

<pallas_src>
import functools

import jax
import jax.numpy as jnp
from jax.experimental import pallas as pl
from jax.experimental.pallas import tpu as pltpu


def actor_critic_kernel(x_ref, p_ref, out_ref, *, d, dp, h):
    """Fused ActorCritic forward on one batch tile.

    p_ref is a single lane-dense parameter slab [dp + 8, 2H]:
      rows 0..d-1 : fused first-layer weight  [D, 2H]  (pi1 | v1)
      row  dp     : fused first-layer bias    (b_pi1 | b_v1)
      row  dp+1   : dense head-weight vector  (w_pi  | w_v)
      row  dp+2   : head biases at lane 0 (b_pi) and lane 1 (b_v)
    """
    # Fused first layer: [B, D] @ [D, 2H] -> [B, 2H], f32 MXU accumulate.
    h1 = jnp.dot(x_ref[...], p_ref[0:d, :], preferred_element_type=jnp.float32)

    # Parameter rows read straight out of the slab (static ref slices, no extra DMAs).
    b1 = p_ref[dp:dp + 1, :].astype(jnp.float32)            # [1, 2H]
    w_head = p_ref[dp + 1:dp + 2, :].astype(jnp.float32)    # [1, 2H]
    b_head = p_ref[dp + 2:dp + 3, :].astype(jnp.float32)    # [1, 2H]

    h1 = jnp.maximum(h1 + b1, 0.0)                          # bias + relu, f32 VPU

    # Heads as VPU multiply + XLU lane reduce (skip a <1%-utilized N=2 MXU pass);
    # reduction stays in f32.
    hw = h1 * w_head                                        # [B, 2H] f32
    pi = jnp.sum(hw[:, :h], axis=-1, keepdims=True)         # [B, 1]
    v = jnp.sum(hw[:, h:], axis=-1, keepdims=True)          # [B, 1]

    out_ref[:, 0:1] = pi + b_head[:, 0:1]
    out_ref[:, 1:2] = v + b_head[:, 1:2]


def actor_critic_forward(x, fused, *, batch_block=512):
    """x: [B, D]. fused: output of prepare_fused_params.
    Returns (pi [B, 1], v [B, 1]) float32, matching ActorCritic.forward."""
    slab = fused["slab"]
    B, D = x.shape
    rows, H2 = slab.shape
    dp, h = rows - 8, H2 // 2
    assert D <= dp, "x feature dim does not match prepared parameter slab"

    # Pre-cast x to the weight dtype in the wrapper (bf16 path: halves the x DMA
    # and removes the in-kernel cast before the first vmatmul).
    x = x.astype(slab.dtype)
    kernel = functools.partial(actor_critic_kernel, d=D, dp=dp, h=h)

    if B > batch_block and B % batch_block == 0:
        # Rollout-sized batches: tile over B.  "parallel" shards blocks across
        # v7x's 2 TensorCores and turns on double-buffered x/out DMA overlap
        # on v5e/v6e; weights stay resident (constant index_map).
        grid = (B // batch_block,)
        in_specs = [pl.BlockSpec((batch_block, D), lambda i: (i, 0)),
                    pl.BlockSpec((rows, H2), lambda i: (0, 0))]
        out_specs = pl.BlockSpec((batch_block, 2), lambda i: (i, 0))
        cparams = pltpu.CompilerParams(dimension_semantics=("parallel",))
    else:
        # Tiny per-step batch: single invocation, everything VMEM-resident, 2 DMAs.
        grid = ()
        in_specs = [pl.BlockSpec((B, D), lambda: (0, 0)),
                    pl.BlockSpec((rows, H2), lambda: (0, 0))]
        out_specs = pl.BlockSpec((B, 2), lambda: (0, 0))
        cparams = None

    out = pl.pallas_call(
        kernel,
        out_shape=jax.ShapeDtypeStruct((B, 2), jnp.float32),
        grid=grid,
        in_specs=in_specs,
        out_specs=out_specs,
        compiler_params=cparams,
    )(x, slab)
    return out[:, 0:1], out[:, 1:2]


def init_params(key, input_dim, hidden=128):
    """Deterministic init mirroring nn.Linear's U(-1/sqrt(fan_in), 1/sqrt(fan_in)).
    Stored as [in, out] (transpose of PyTorch's [out, in]); checkpoint loaders
    must transpose."""
    keys = jax.random.split(key, 8)

    def linear(kw, kb, fan_in, fan_out):
        bound = 1.0 / jnp.sqrt(jnp.float32(fan_in))
        w = jax.random.uniform(kw, (fan_in, fan_out), jnp.float32, -bound, bound)
        b = jax.random.uniform(kb, (1, fan_out), jnp.float32, -bound, bound)
        return w, b

    w_pi1, b_pi1 = linear(keys[0], keys[1], input_dim, hidden)
    w_v1, b_v1 = linear(keys[2], keys[3], input_dim, hidden)
    w_pi, b_pi = linear(keys[4], keys[5], hidden, 1)
    w_v, b_v = linear(keys[6], keys[7], hidden, 1)
    return {
        "w_pi1": w_pi1, "b_pi1": b_pi1,
        "w_v1": w_v1, "b_v1": b_v1,
        "w_pi": w_pi, "b_pi": b_pi,
        "w_v": w_v, "b_v": b_v,
    }


def prepare_fused_params(p, use_bf16=True):
    """One-time param prep: pack ALL parameters into a single lane-dense slab.

    Slab layout ([Dp + 8, 2H], Dp = ceil(D/8)*8):
      rows 0..D-1 : [w_pi1 | w_v1]
      row  Dp     : [b_pi1 | b_v1]
      row  Dp+1   : [w_pi  | w_v ]   (dense head-weight vector)
      row  Dp+2   : b_pi at lane 0, b_v at lane 1

    use_bf16=True stores the slab as bfloat16 (recommended on v5e/v6e/v7x: the
    MXU is natively bf16, so f32 operands cost ~3x the passes; DMA bytes are
    halved too).  Accumulation and elementwise math stay float32 in-kernel.
    """
    D, H = p["w_pi1"].shape
    H2 = 2 * H
    dp = ((D + 7) // 8) * 8
    rows = dp + 8                                  # pad rows to a multiple of 8

    slab = jnp.zeros((rows, H2), jnp.float32)
    slab = slab.at[:D, :H].set(p["w_pi1"])
    slab = slab.at[:D, H:].set(p["w_v1"])
    slab = slab.at[dp, :H].set(p["b_pi1"][0])
    slab = slab.at[dp, H:].set(p["b_v1"][0])
    slab = slab.at[dp + 1, :H].set(p["w_pi"][:, 0])
    slab = slab.at[dp + 1, H:].set(p["w_v"][:, 0])
    slab = slab.at[dp + 2, 0].set(p["b_pi"][0, 0])
    slab = slab.at[dp + 2, 1].set(p["b_v"][0, 0])
    if use_bf16:
        slab = slab.astype(jnp.bfloat16)
    return {"slab": slab, "input_dim": D, "hidden": H}


def reference_forward(x, p):
    pi1 = jnp.maximum(x @ p["w_pi1"] + p["b_pi1"], 0.0)
    v1 = jnp.maximum(x @ p["w_v1"] + p["b_v1"], 0.0)
    return pi1 @ p["w_pi"] + p["b_pi"], v1 @ p["w_v"] + p["b_v"]


# TODO(synk): remember/clear_memory/calc_R/calc_loss are host-side RL
# bookkeeping / training logic, not part of the forward pass; not kernelized.
# TODO(synk): choose_action's clamp(pi, 20, 160) and the launch-amortizing
# "batch many env states per call" pattern can be fused/driven from the wrapper
# once the surrounding training loop is ported.

if __name__ == "__main__":
    key = jax.random.PRNGKey(0)
    k_params, k_x = jax.random.split(key)

    B, D = 8, 16          # batch=8, input_dims=(16,)
    params = init_params(k_params, D, hidden=128)
    x = jax.random.normal(k_x, (B, D), dtype=jnp.float32)

    pi_ref, v_ref = reference_forward(x, params)

    # float32 slab (exact match to the PyTorch-style reference).
    fused_f32 = prepare_fused_params(params, use_bf16=False)
    pi, v = jax.block_until_ready(actor_critic_forward(x, fused_f32))
    assert pi.shape == (B, 1) and v.shape == (B, 1)
    assert jnp.allclose(pi, pi_ref, atol=1e-4, rtol=1e-4)
    assert jnp.allclose(v, v_ref, atol=1e-4, rtol=1e-4)

    # bf16 matmul-operand path (recommended on all generations); f32 accumulation
    # and f32 head reduce, so only weight/activation-rounding error remains.
    fused_bf16 = prepare_fused_params(params, use_bf16=True)
    pi_b, v_b = jax.block_until_ready(actor_critic_forward(x, fused_bf16))
    assert jnp.allclose(pi_b, pi_ref, atol=5e-2, rtol=5e-2)
    assert jnp.allclose(v_b, v_ref, atol=5e-2, rtol=5e-2)

    # Exercise the batched (grid) path used for rollout-sized batches.
    Bb = 256
    xb = jax.random.normal(jax.random.PRNGKey(1), (Bb, D), dtype=jnp.float32)
    pib_ref, vb_ref = reference_forward(xb, params)
    pib, vb = jax.block_until_ready(
        actor_critic_forward(xb, fused_f32, batch_block=128))
    assert pib.shape == (Bb, 1) and vb.shape == (Bb, 1)
    assert jnp.allclose(pib, pib_ref, atol=1e-4, rtol=1e-4)
    assert jnp.allclose(vb, vb_ref, atol=1e-4, rtol=1e-4)

    print("KERNEL_OK")
</pallas_src>

<mosaic_0001>
module attributes {stable_mosaic.version = 11 : i64} {
  func.func @actor_critic_kernel(%arg0: memref<8x16xf32, #tpu.memory_space<vmem>>, %arg1: memref<24x256xf32, #tpu.memory_space<vmem>>, %arg2: memref<8x2xf32, #tpu.memory_space<vmem>>) attributes {dimension_semantics = [], scalar_prefetch = 0 : i64, scratch_operands = 0 : i64, tpu.core_type = #tpu.core_type<tc>} {
    %c0 = arith.constant 0 : index
    %c0_0 = arith.constant 0 : index
    %0 = vector.load %arg0[%c0, %c0_0] : memref<8x16xf32, #tpu.memory_space<vmem>>, vector<8x16xf32>
    %c0_1 = arith.constant 0 : index
    %c0_2 = arith.constant 0 : index
    %1 = vector.load %arg1[%c0_1, %c0_2] : memref<24x256xf32, #tpu.memory_space<vmem>>, vector<16x256xf32>
    %cst = arith.constant dense<0.000000e+00> : vector<8x256xf32>
    %2 = tpu.matmul %0, %1, %cst {dimension_numbers = #tpu.dot_dimension_numbers<[1], [0], [0], [1], [0, 0, 1, 1], [], []>} : vector<8x16xf32>, vector<16x256xf32>, vector<8x256xf32> -> vector<8x256xf32>
    %c16 = arith.constant 16 : index
    %c0_3 = arith.constant 0 : index
    %3 = vector.load %arg1[%c16, %c0_3] : memref<24x256xf32, #tpu.memory_space<vmem>>, vector<1x256xf32>
    %c17 = arith.constant 17 : index
    %c0_4 = arith.constant 0 : index
    %4 = vector.load %arg1[%c17, %c0_4] : memref<24x256xf32, #tpu.memory_space<vmem>>, vector<1x256xf32>
    %c18 = arith.constant 18 : index
    %c0_5 = arith.constant 0 : index
    %5 = vector.load %arg1[%c18, %c0_5] : memref<24x256xf32, #tpu.memory_space<vmem>>, vector<1x256xf32>
    %6 = vector.broadcast %3 : vector<1x256xf32> to vector<8x256xf32>
    %7 = arith.addf %2, %6 : vector<8x256xf32>
    %cst_6 = arith.constant 0.000000e+00 : f32
    %8 = vector.broadcast %cst_6 : f32 to vector<8x256xf32>
    %9 = arith.maximumf %7, %8 : vector<8x256xf32>
    %10 = vector.broadcast %4 : vector<1x256xf32> to vector<8x256xf32>
    %11 = arith.mulf %9, %10 : vector<8x256xf32>
    %12 = vector.extract_strided_slice %11 {offsets = [0, 0], sizes = [8, 128], strides = [1, 1]} : vector<8x256xf32> to vector<8x128xf32>
    %cst_7 = arith.constant dense<0.000000e+00> : vector<8xf32>
    %13 = vector.multi_reduction <add>, %12, %cst_7 [1] : vector<8x128xf32> to vector<8xf32>
    %14 = vector.shape_cast %13 : vector<8xf32> to vector<8x1xf32>
    %15 = vector.extract_strided_slice %11 {offsets = [0, 128], sizes = [8, 128], strides = [1, 1]} : vector<8x256xf32> to vector<8x128xf32>
    %cst_8 = arith.constant dense<0.000000e+00> : vector<8xf32>
    %16 = vector.multi_reduction <add>, %15, %cst_8 [1] : vector<8x128xf32> to vector<8xf32>
    %17 = vector.shape_cast %16 : vector<8xf32> to vector<8x1xf32>
    %18 = vector.extract_strided_slice %5 {offsets = [0, 0], sizes = [1, 1], strides = [1, 1]} : vector<1x256xf32> to vector<1x1xf32>
    %19 = vector.broadcast %18 : vector<1x1xf32> to vector<8x1xf32>
    %20 = arith.addf %14, %19 : vector<8x1xf32>
    %c0_9 = arith.constant 0 : index
    %c0_10 = arith.constant 0 : index
    %21 = vector.load %arg2[%c0_9, %c0_10] : memref<8x2xf32, #tpu.memory_space<vmem>>, vector<8x1xf32>
    tpu.vector_store %arg2[%c0_9, %c0_10], %20 {strides = array<i32>} : memref<8x2xf32, #tpu.memory_space<vmem>>, vector<8x1xf32>,
    %22 = vector.extract_strided_slice %5 {offsets = [0, 1], sizes = [1, 1], strides = [1, 1]} : vector<1x256xf32> to vector<1x1xf32>
    %23 = vector.broadcast %22 : vector<1x1xf32> to vector<8x1xf32>
    %24 = arith.addf %17, %23 : vector<8x1xf32>
    %c0_11 = arith.constant 0 : index
    %c1 = arith.constant 1 : index
    %25 = vector.load %arg2[%c0_11, %c1] : memref<8x2xf32, #tpu.memory_space<vmem>>, vector<8x1xf32>
    tpu.vector_store %arg2[%c0_11, %c1], %24 {strides = array<i32>} : memref<8x2xf32, #tpu.memory_space<vmem>>, vector<8x1xf32>,
    return
  }
}

</mosaic_0001>

<bundles_post_ra>
// kernel: tpu_custom_call.1
= control target key start
LH: loop header
LB: loop body
LE: loop exit
PB: predicated region body
PF: predicated region fallthrough
CT: control target
= control target key end

     0   :  { %7 = vsyncpa [#allocation3], 0  ;;  %s253_s0 = inlined_call_operand.hbm [shape: f32[8,16], index: 0, kind: input, shape index: {}]   ;;  %s254_s1 = inlined_call_operand.hbm [shape: f32[24,256], index: 1, kind: input, shape index: {}]   ;;  %s255_s2 = inlined_call_operand.vmem [shape: f32[8,2], index: 2, kind: output, shape index: {}]  }
   0x1   :  { %8 = vsyncpa [#allocation5], 0  ;;  %s221_s9 = smov [#allocation2]   ;;  %s222_s11 = smov [#allocation4]  }
   0x2   :  { %s15_s10 = sshll.u32 %s221_s9, 4  ;;  %s24_s12 = sshll.u32 %s222_s11, 4  ;;  %s16_s10 = int_to_ptr.vmem [resolvable:$true] %s15_s10  ;;  %s25_s12 = int_to_ptr.vmem [resolvable:$true] %s24_s12 }
   0x3   :  { %s185_s13 = scalar_lea.vmem %s16_s10, 128  ;;  %p190_p1 = scmp.lt.s32.totalorder %s16_s10, %s16_s10 }
   0x4   :  { %p186_p0 = scmp.ne.s32.totalorder %s16_s10, %s185_s13  ;;  %p191_p2 = scmp.lt.s32.totalorder %s185_s13, %s185_s13 }
   0x6   :  { %p192_p3 = por %p191_p2, %p190_p1 }
   0x8   :  { %p193_p4 = pnand %p192_p3, %p186_p0 }
   0xa   :  { %196 = shalt.err (!%p193_p4)
}
   0xb   :  { %18 = dma.hbm_to_vmem [thread:$0]  %s253_s0, 128, %s16_s10, [#allocation3]  }
   0xc   :  { %s205_s16 = scalar_lea.vmem %s25_s12, 768  ;;  %p210_p6 = scmp.lt.s32.totalorder %s25_s12, %s25_s12 }
   0xd   :  { %p206_p5 = scmp.ne.s32.totalorder %s25_s12, %s205_s16  ;;  %p211_p7 = scmp.lt.s32.totalorder %s205_s16, %s205_s16 }
   0xf   :  { %p212_p8 = por %p211_p7, %p210_p6 }
  0x11   :  { %p213_p9 = pnand %p212_p8, %p206_p5 }
  0x13   :  { %216 = shalt.err (!%p213_p9)
}
  0x14   :  { %s223_s17 = smov 256   ;;  %s224_s18 = smov 16  }
  0x15   :  { %30 = dma.hbm_to_vmem [thread:$0]  %s254_s1, 768, %s25_s12, [#allocation5], %s223_s17, %s223_s17, %s224_s18  }
  0x16   :  { %217 = dma.done.wait [#allocation3], 128  }
  0x17   :  { %218 = vsyncadd [#allocation3], 4294967168 }
  0x18   :  { %219 = dma.done.wait [#allocation5], 768  }
  0x19   :  { %220 = vsyncadd [#allocation5], 4294966528  ;;  %v225_v0 = vmov 0.0   ;;  %v41_v1 = vld [vmem:[#allocation4 + $0x18] sm:$0xff]  ;;  %v40_v2 = vld [vmem:[#allocation4 + $0x10] sm:$0xff]  ;;  %vm59_vm0 = vcmask 130048   ;;  %v49_v6 = vlaneseq }
  0x1a   :  { %127 = vmatprep.mubr.f32.mxu0 %v225_v0  ;;  %v39_v3 = vld [vmem:[#allocation4 + $0x8] sm:$0xff]  ;;  %91 = vmatprep.subr.mxu0 %v41_v1  ;;  %v38_v4 = vld [vmem:[#allocation4] sm:$0xff]  ;;  %v37_v5 = vld [vmem:[#allocation2] sm:$0xff]  ;;  %vm160_vm1 = vcmask 7168   ;;  %vm163_vm2 = vcmask 15368  }
  0x1b   :  { %92 = vmatpush1.msra.mxu0 %v40_v2  ;;  %v50_v7 = vshrl.u32 %v49_v6, 7  ;;  %v43_v9 = vld [vmem:[#allocation4 + $0x20] ss:$8 sm:$0x3] }
  0x1c   :  { %93 = vmatprep.subr.mxu0 %v39_v3  ;;  %v45_v12 = vld [vmem:[#allocation4 + $0x21] ss:$8 sm:$0x3]  ;;  %v47_v24 = vld [vmem:[#allocation4 + $0x22] ss:$8 sm:$0x3] }
  0x1d   :  { %94 = vmatpush1.msra.mxu0 %v38_v4  ;;  %v51_v8 = vsub.s32 0, %v50_v7  ;;  %v55_v10 = vsub.s32 1, %v50_v7 }
  0x1e   :  { %171 = vmatmul.mubr.msk.f32.vlgmr.msra.gmra.mxu0 %vm59_vm0, %v37_v5 }
  0x1f   :  { %v52_v11 = vrot.slane %v43_v9, %v51_v8  ;;  %v56_v13 = vrot.slane %v43_v9, %v55_v10  ;;  %v140_v16 = vrot.slane %v45_v12, %v51_v8  ;;  %v144_v22 = vrot.slane %v45_v12, %v55_v10 }
  0x20   :  { %v157_v25 = vrot.slane %v47_v24, %v51_v8 }
  0xde   :  { %v129_v14 = vpop.f32.mrf.mxu0 }
  0xdf   :  { %v130_v15 = vadd.f32 %v129_v14, %v52_v11 }
  0xe0   :  { %v131_v17 = vpop.f32.mrf.mxu0 }
  0xe1   :  { %v134_v18 = vmax.f32 %v130_v15, 0.0  ;;  %v132_v19 = vadd.f32 %v131_v17, %v56_v13 }
  0xe3   :  { %v135_v20 = vmax.f32 %v132_v19, 0.0  ;;  %v147_v21 = vmul.f32 %v140_v16, %v134_v18 }
  0xe5   :  { %149 = vadd.xlane.f32.xlu0 %v147_v21  ;;  %v148_v23 = vmul.f32 %v144_v22, %v135_v20 }
  0xe9   :  { %151 = vadd.xlane.f32.xlu0 %v148_v23 }
 0x16e   :  { %v150_v26 = vpop.xlane.xlu0 %149 }
 0x16f   :  { %v159_v27 = vadd.f32 %v157_v25, %v150_v26 }
 0x171   :  { %161 = vst.msk [vmem:[%s255_s2] sm:$0xff] %vm160_vm1, %v159_v27 }
 0x172   :  { %v152_v28 = vpop.xlane.xlu0 %151 }
 0x173   :  { %v162_v29 = vadd.f32 %v157_v25, %v152_v28 }
 0x175   :  { %164 = vst.msk [vmem:[%s255_s2] sm:$0xff] %vm163_vm2, %v162_v29 }
 0x176   :  { %169 = vsyncpa [#allocation3], 1 }
 0x177   :  { %170 = vsyncpa [#allocation5], 1 }

</bundles_post_ra>
